<compile_context>
chip_gen: v7x
topology: tpu7x:2x2x1
jax: 0.10.0
libtpu: 0.0.40
codegen_flags: <defaults>
</compile_context>

<pallas_src>
from typing import NamedTuple

import jax
import jax.numpy as jnp
from jax.experimental import pallas as pl
from jax.experimental.pallas import tpu as pltpu

_LANE = 128     # vreg lane width (last dim)
_SUBLANE = 8    # vreg sublane height (second-to-last dim, f32)


def _round_up(n, m):
    return ((n + m - 1) // m) * m


def _vmem_limit_bytes():
    """Generation-aware scoped-VMEM budget (~75% of physical per-core VMEM)."""
    cap = 64 * 1024 * 1024
    try:
        info = pltpu.get_tpu_info()
        cap = int(getattr(info, "vmem_capacity_bytes", cap) or cap)
    except Exception:
        pass
    return int(cap * 3 // 4)


# --------------------------------------------------------------------------
# Kernels
# --------------------------------------------------------------------------
def _mlp_kernel(x_ref, w1_ref, b1_ref, w2_ref, b2_ref, out_ref):
    """Fused fc1 -> ReLU -> fc2 on one (batch-tile) block.

    x may arrive f32 (unpadded fast path) or bf16 (padded path); it is cast to
    the weight compute dtype in VMEM on the VPU.  Both matmuls accumulate in
    f32 on the MXU; bias add + ReLU run in f32.
    """
    x = x_ref[...].astype(w1_ref.dtype)                       # in-VMEM cast
    h = jnp.dot(x, w1_ref[...], preferred_element_type=jnp.float32)
    h = jnp.maximum(h + b1_ref[...], 0.0)                     # f32 bias + ReLU
    o = jnp.dot(h.astype(w2_ref.dtype), w2_ref[...],
                preferred_element_type=jnp.float32)
    out_ref[...] = (o + b2_ref[...]).astype(out_ref.dtype)


def _mlp_htiled_kernel(x_ref, w1_ref, b1_ref, w2_ref, b2_ref, out_ref, acc_ref):
    """H-tiled variant: grid = (batch_tiles, h_tiles), hidden axis reduced into
    an f32 VMEM accumulator (init at j==0, finalize at j==last)."""
    j = pl.program_id(1)

    @pl.when(j == 0)
    def _():
        acc_ref[...] = jnp.zeros_like(acc_ref)

    x = x_ref[...].astype(w1_ref.dtype)
    h = jnp.dot(x, w1_ref[...], preferred_element_type=jnp.float32)
    h = jnp.maximum(h + b1_ref[...], 0.0)
    acc_ref[...] += jnp.dot(h.astype(w2_ref.dtype), w2_ref[...],
                            preferred_element_type=jnp.float32)

    @pl.when(j == pl.num_programs(1) - 1)
    def _():
        out_ref[...] = (acc_ref[...] + b2_ref[...]).astype(out_ref.dtype)


# --------------------------------------------------------------------------
# One-time parameter preparation (hoisted out of the forward pass)
# --------------------------------------------------------------------------
class MLPParams(NamedTuple):
    w1p: jax.Array   # [Dp, Hp] compute dtype (bf16)
    b1p: jax.Array   # [1, Hp]  f32
    w2p: jax.Array   # [Hp, Cp] compute dtype (bf16)
    b2p: jax.Array   # [1, Cp]  f32


def prepare_params(w1, b1, w2, b2, compute_dtype=jnp.bfloat16):
    """Pad + cast weights once.  Weights are [in, out] (transpose of PyTorch's
    nn.Linear [out, in]) so the kernel computes plain x @ W."""
    D_in, H = w1.shape
    C = w2.shape[1]
    Dp, Hp, Cp = (_round_up(d, _LANE) for d in (D_in, H, C))
    w1p = jnp.zeros((Dp, Hp), compute_dtype).at[:D_in, :H].set(
        w1.astype(compute_dtype))
    w2p = jnp.zeros((Hp, Cp), compute_dtype).at[:H, :C].set(
        w2.astype(compute_dtype))
    # Padded weight/bias columns are zero -> padded output lanes are exactly 0
    # and are sliced off in the wrapper.
    b1p = jnp.zeros((1, Hp), jnp.float32).at[0, :H].set(b1.astype(jnp.float32))
    b2p = jnp.zeros((1, Cp), jnp.float32).at[0, :C].set(b2.astype(jnp.float32))
    return MLPParams(w1p, b1p, w2p, b2p), (D_in, H, C)


# --------------------------------------------------------------------------
# Forward pass
# --------------------------------------------------------------------------
def mlp_forward(x, params, dims, *, batch_tile=1024, out_dtype=None,
                force_h_tiling=False):
    """x: [B, D_in] -> [B, C], using pre-padded params from prepare_params."""
    D_in, H, C = dims
    w1p, b1p, w2p, b2p = params
    Dp, Hp = w1p.shape
    Cp = w2p.shape[1]
    B = x.shape[0]
    assert x.shape[1] == D_in, (x.shape, D_in)
    out_dtype = x.dtype if out_dtype is None else out_dtype
    compute_dtype = w1p.dtype

    limit = _vmem_limit_bytes()
    batch_tile = max(_round_up(batch_tile, _SUBLANE), _SUBLANE)
    Bp = _round_up(B, _SUBLANE)

    xbytes = 4                                   # conservative (f32 tile)
    obytes = jnp.dtype(out_dtype).itemsize

    # ------------------------- small case: gridless -------------------------
    def small_fits():
        total = (Bp * Dp * xbytes
                 + 2 * (Dp * Hp + Hp * Cp)            # bf16 weights
                 + 4 * (Hp + Cp)                      # f32 biases
                 + Bp * Cp * obytes                   # output
                 + 4 * Bp * (Hp + Cp))                # f32 intermediates
        return total < 0.6 * limit

    if (not force_h_tiling) and Bp <= batch_tile and small_fits():
        need_pad = (D_in != Dp) or (B != Bp)
        if need_pad:
            xp = jnp.zeros((Bp, Dp), compute_dtype).at[:B, :D_in].set(
                x.astype(compute_dtype))              # single fused pad+cast
        else:
            xp = x                                    # cast happens in-kernel
        vmem = pl.BlockSpec(memory_space=pltpu.MemorySpace.VMEM)
        out = pl.pallas_call(
            _mlp_kernel,
            out_shape=jax.ShapeDtypeStruct((xp.shape[0], Cp), out_dtype),
            in_specs=[vmem] * 5,
            out_specs=vmem,
            compiler_params=pltpu.CompilerParams(vmem_limit_bytes=limit),
        )(xp, w1p, b1p, w2p, b2p)
        # TODO(synk): fold this slice into the consumer to avoid the extra copy.
        return out[:B, :C]

    # ------------------- scaling path: batch-tiled grid ---------------------
    def resident_fits(tb):
        total = (2 * 2 * (Dp * Hp + Hp * Cp)                  # 2x-buffered weights
                 + 2 * 4 * (Hp + Cp)
                 + 2 * tb * (Dp * xbytes + Cp * obytes)       # 2x-buffered io tiles
                 + 4 * tb * (Hp + Cp))                        # f32 intermediates
        return total < 0.7 * limit

    TB = min(batch_tile, _round_up(pl.cdiv(Bp, 2), _SUBLANE))
    TB = max(TB, _SUBLANE)
    while TB > 256 and not resident_fits(TB):
        TB = _round_up(TB // 2, _SUBLANE)

    steps = pl.cdiv(Bp, TB)
    if steps > 1 and steps % 2 == 1:
        # Even step count so v7x's 2 TensorCores split the batch grid evenly.
        steps += 1
        TB = max(_round_up(pl.cdiv(Bp, steps), _SUBLANE), _SUBLANE)
        steps = pl.cdiv(Bp, TB)
    Bt = steps * TB

    # Pad x exactly once, directly to the final tiled extent (fused pad+cast).
    need_pad = (D_in != Dp) or (B != Bt)
    if need_pad:
        xp = jnp.zeros((Bt, Dp), compute_dtype).at[:B, :D_in].set(
            x.astype(compute_dtype))
    else:
        xp = x                                        # cast happens in-kernel

    use_resident = resident_fits(TB) and not force_h_tiling
    if use_resident:
        out = pl.pallas_call(
            _mlp_kernel,
            out_shape=jax.ShapeDtypeStruct((Bt, Cp), out_dtype),
            grid_spec=pltpu.PrefetchScalarGridSpec(
                num_scalar_prefetch=0,
                grid=(steps,),
                in_specs=[
                    pl.BlockSpec((TB, Dp), lambda i: (i, 0)),   # x: batch-tiled
                    pl.BlockSpec((Dp, Hp), lambda i: (0, 0)),   # w1: resident
                    pl.BlockSpec((1, Hp), lambda i: (0, 0)),    # b1: resident
                    pl.BlockSpec((Hp, Cp), lambda i: (0, 0)),   # w2: resident
                    pl.BlockSpec((1, Cp), lambda i: (0, 0)),    # b2: resident
                ],
                out_specs=pl.BlockSpec((TB, Cp), lambda i: (i, 0)),
            ),
            compiler_params=pltpu.CompilerParams(
                dimension_semantics=("parallel",),
                vmem_limit_bytes=limit,
            ),
        )(xp, w1p, b1p, w2p, b2p)
        return out[:B, :C]

    # -------- H-tiled fallback: weights too large to keep fully resident ----
    def htiled_fits(th):
        total = (2 * 2 * th * (Dp + Cp)
                 + 2 * 4 * th + 4 * Cp
                 + 2 * TB * (Dp * xbytes + Cp * obytes)
                 + 4 * TB * (th + Cp)
                 + 4 * TB * Cp)                       # f32 accumulator scratch
        return total < 0.7 * limit

    TH = _LANE
    for cand in (2048, 1024, 512, 256, 128):          # 256-multiples preferred
        if Hp % cand == 0:
            TH = cand
            if htiled_fits(cand):
                break
    h_steps = Hp // TH

    out = pl.pallas_call(
        _mlp_htiled_kernel,
        out_shape=jax.ShapeDtypeStruct((Bt, Cp), out_dtype),
        grid_spec=pltpu.PrefetchScalarGridSpec(
            num_scalar_prefetch=0,
            grid=(steps, h_steps),                    # reduction axis last
            in_specs=[
                pl.BlockSpec((TB, Dp), lambda i, j: (i, 0)),
                pl.BlockSpec((Dp, TH), lambda i, j: (0, j)),
                pl.BlockSpec((1, TH), lambda i, j: (0, j)),
                pl.BlockSpec((TH, Cp), lambda i, j: (j, 0)),
                pl.BlockSpec((1, Cp), lambda i, j: (0, 0)),
            ],
            out_specs=pl.BlockSpec((TB, Cp), lambda i, j: (i, 0)),
            scratch_shapes=[pltpu.VMEM((TB, Cp), jnp.float32)],
        ),
        compiler_params=pltpu.CompilerParams(
            dimension_semantics=("parallel", "arbitrary"),
            vmem_limit_bytes=limit,
        ),
    )(xp, w1p, b1p, w2p, b2p)
    return out[:B, :C]


# --------------------------------------------------------------------------
# References
# --------------------------------------------------------------------------
def _bf16_policy_ref(x, w1, b1, w2, b2):
    """Plain-JAX reference with the same precision policy as the kernel."""
    xb, w1b, w2b = (a.astype(jnp.bfloat16) for a in (x, w1, w2))
    h = jnp.dot(xb, w1b, preferred_element_type=jnp.float32) + b1
    h = jnp.maximum(h, 0.0)
    o = jnp.dot(h.astype(jnp.bfloat16), w2b,
                preferred_element_type=jnp.float32) + b2
    return o


if __name__ == "__main__":
    # Small shapes consistent with MLPModel(input_size, hidden_size, num_classes)
    batch = 8
    input_size = 64
    hidden_size = 32
    num_classes = 10

    key = jax.random.PRNGKey(0)
    kx, kw1, kb1, kw2, kb2, kw1b, kb1b, kw2b = jax.random.split(key, 8)

    x = jax.random.normal(kx, (batch, input_size), dtype=jnp.float32)
    w1 = jax.random.normal(kw1, (input_size, hidden_size), dtype=jnp.float32) * 0.1
    b1 = jax.random.normal(kb1, (hidden_size,), dtype=jnp.float32) * 0.1
    w2 = jax.random.normal(kw2, (hidden_size, num_classes), dtype=jnp.float32) * 0.1
    b2 = jax.random.normal(kb2, (num_classes,), dtype=jnp.float32) * 0.1

    # One-time parameter prep (padding/casting hoisted out of the forward).
    params, dims = prepare_params(w1, b1, w2, b2)
    jax.block_until_ready(params)

    # --- small case: gridless VMEM-resident kernel -------------------------
    fwd = jax.jit(lambda xv, pv: mlp_forward(xv, pv, dims))
    out = jax.block_until_ready(fwd(x, params))
    assert out.shape == (batch, num_classes)
    assert out.dtype == x.dtype

    ref_bf16 = _bf16_policy_ref(x, w1, b1, w2, b2)
    assert jnp.allclose(out, ref_bf16, atol=1e-4, rtol=1e-4)

    # Looser fidelity check vs. the pure-f32 PyTorch-equivalent math.
    ref_f32 = jnp.maximum(x @ w1 + b1, 0.0) @ w2 + b2
    assert jnp.allclose(out, ref_f32, atol=1e-1, rtol=1e-1)

    # --- scaling path: batch-tiled grid with resident weights --------------
    big_batch = 600                 # non-multiple of 8 -> exercises row padding
    xb_big = jax.random.normal(kx, (big_batch, input_size), dtype=jnp.float32)
    fwd_grid = jax.jit(lambda xv, pv: mlp_forward(xv, pv, dims, batch_tile=256))
    out_big = jax.block_until_ready(fwd_grid(xb_big, params))
    ref_big = _bf16_policy_ref(xb_big, w1, b1, w2, b2)
    assert out_big.shape == (big_batch, num_classes)
    assert jnp.allclose(out_big, ref_big, atol=1e-4, rtol=1e-4)

    # --- H-tiled fallback (accumulator path), forced for coverage ----------
    hidden_big = 300                # pads to 384 -> 3 hidden tiles of 128
    w1b_ = jax.random.normal(kw1b, (input_size, hidden_big), dtype=jnp.float32) * 0.1
    b1b_ = jax.random.normal(kb1b, (hidden_big,), dtype=jnp.float32) * 0.1
    w2b_ = jax.random.normal(kw2b, (hidden_big, num_classes), dtype=jnp.float32) * 0.1
    params_h, dims_h = prepare_params(w1b_, b1b_, w2b_, b2)
    fwd_h = jax.jit(lambda xv, pv: mlp_forward(xv, pv, dims_h,
                                               force_h_tiling=True))
    out_h = jax.block_until_ready(fwd_h(x, params_h))
    ref_h = _bf16_policy_ref(x, w1b_, b1b_, w2b_, b2)
    assert out_h.shape == (batch, num_classes)
    assert jnp.allclose(out_h, ref_h, atol=1e-3, rtol=1e-3)

    print("KERNEL_OK")
</pallas_src>

<mosaic_0001>
module attributes {stable_mosaic.version = 11 : i64} {
  func.func @_mlp_kernel(%arg0: memref<8x128xbf16, #tpu.memory_space<vmem>>, %arg1: memref<128x128xbf16, #tpu.memory_space<vmem>>, %arg2: memref<1x128xf32, #tpu.memory_space<vmem>>, %arg3: memref<128x128xbf16, #tpu.memory_space<vmem>>, %arg4: memref<1x128xf32, #tpu.memory_space<vmem>>, %arg5: memref<8x128xf32, #tpu.memory_space<vmem>>) attributes {dimension_semantics = [], scalar_prefetch = 0 : i64, scratch_operands = 0 : i64, tpu.core_type = #tpu.core_type<tc>} {
    %c0 = arith.constant 0 : index
    %c0_0 = arith.constant 0 : index
    %0 = vector.load %arg0[%c0, %c0_0] : memref<8x128xbf16, #tpu.memory_space<vmem>>, vector<8x128xbf16>
    %c0_1 = arith.constant 0 : index
    %c0_2 = arith.constant 0 : index
    %1 = vector.load %arg1[%c0_1, %c0_2] : memref<128x128xbf16, #tpu.memory_space<vmem>>, vector<128x128xbf16>
    %cst = arith.constant dense<0.000000e+00> : vector<8x128xf32>
    %2 = tpu.matmul %0, %1, %cst {dimension_numbers = #tpu.dot_dimension_numbers<[1], [0], [0], [1], [0, 0, 1, 1], [], []>} : vector<8x128xbf16>, vector<128x128xbf16>, vector<8x128xf32> -> vector<8x128xf32>
    %c0_3 = arith.constant 0 : index
    %c0_4 = arith.constant 0 : index
    %3 = vector.load %arg2[%c0_3, %c0_4] : memref<1x128xf32, #tpu.memory_space<vmem>>, vector<1x128xf32>
    %4 = vector.broadcast %3 : vector<1x128xf32> to vector<8x128xf32>
    %5 = arith.addf %2, %4 : vector<8x128xf32>
    %cst_5 = arith.constant 0.000000e+00 : f32
    %6 = vector.broadcast %cst_5 : f32 to vector<8x128xf32>
    %7 = arith.maximumf %5, %6 : vector<8x128xf32>
    %8 = arith.truncf %7 : vector<8x128xf32> to vector<8x128xbf16>
    %c0_6 = arith.constant 0 : index
    %c0_7 = arith.constant 0 : index
    %9 = vector.load %arg3[%c0_6, %c0_7] : memref<128x128xbf16, #tpu.memory_space<vmem>>, vector<128x128xbf16>
    %cst_8 = arith.constant dense<0.000000e+00> : vector<8x128xf32>
    %10 = tpu.matmul %8, %9, %cst_8 {dimension_numbers = #tpu.dot_dimension_numbers<[1], [0], [0], [1], [0, 0, 1, 1], [], []>} : vector<8x128xbf16>, vector<128x128xbf16>, vector<8x128xf32> -> vector<8x128xf32>
    %c0_9 = arith.constant 0 : index
    %c0_10 = arith.constant 0 : index
    %11 = vector.load %arg4[%c0_9, %c0_10] : memref<1x128xf32, #tpu.memory_space<vmem>>, vector<1x128xf32>
    %12 = vector.broadcast %11 : vector<1x128xf32> to vector<8x128xf32>
    %13 = arith.addf %10, %12 : vector<8x128xf32>
    %c0_11 = arith.constant 0 : index
    %c0_12 = arith.constant 0 : index
    %14 = vector.load %arg5[%c0_11, %c0_12] : memref<8x128xf32, #tpu.memory_space<vmem>>, vector<8x128xf32>
    tpu.vector_store %arg5[%c0_11, %c0_12], %13 {strides = array<i32>} : memref<8x128xf32, #tpu.memory_space<vmem>>, vector<8x128xf32>,
    return
  }
}

</mosaic_0001>

<bundles_post_ra>
// kernel: _lambda_.1
= control target key start
LH: loop header
LB: loop body
LE: loop exit
PB: predicated region body
PF: predicated region fallthrough
CT: control target
= control target key end

     0   :  { %10 = vsyncpa [#allocation3], 0  ;;  %s545_s0 = inlined_call_operand.vmem [shape: bf16[8,128], index: 0, kind: input, shape index: {}]   ;;  %s546_s1 = inlined_call_operand.hbm [shape: bf16[128,128], index: 1, kind: input, shape index: {}]   ;;  %s547_s2 = inlined_call_operand.vmem [shape: f32[1,128], index: 2, kind: input, shape index: {}]   ;;  %s548_s3 = inlined_call_operand.hbm [shape: bf16[128,128], index: 3, kind: input, shape index: {}]   ;;  %s549_s4 = inlined_call_operand.vmem [shape: f32[1,128], index: 4, kind: input, shape index: {}]   ;;  %s550_s5 = inlined_call_operand.hbm [shape: f32[8,128], index: 5, kind: output, shape index: {}]  }
   0x1   :  { %11 = vsyncpa [#allocation6], 0 }
   0x2   :  { %12 = vsyncpa [#allocation4], 0  ;;  %s463_s18 = smov [#allocation2]   ;;  %s391_s22 = scalar_lea.hbm %s546_s1, 1024 }
   0x3   :  { %s20_s19 = sshll.u32 %s463_s18, 4  ;;  %p392_p0 = scmp.ne.s32.totalorder %s546_s1, %s391_s22  ;;  %s21_s19 = int_to_ptr.vmem [resolvable:$true] %s20_s19 }
   0x4   :  { %p395_p1 = scmp.lt.u32.totalorder %s391_s22, %s546_s1 }
   0x6   :  { %p397_p2 = pnand %p395_p1, %p392_p0 }
   0x8   :  { %400 = shalt.err (!%p397_p2)
}
   0x9   :  { %s401_s27 = scalar_lea.vmem %s21_s19, 1024  ;;  %p406_p4 = scmp.lt.s32.totalorder %s21_s19, %s21_s19 }
   0xa   :  { %p402_p3 = scmp.ne.s32.totalorder %s21_s19, %s401_s27  ;;  %p407_p5 = scmp.lt.s32.totalorder %s401_s27, %s401_s27 }
   0xc   :  { %p408_p6 = por %p407_p5, %p406_p4 }
   0xe   :  { %p409_p7 = pnand %p408_p6, %p402_p3 }
  0x10   :  { %412 = shalt.err (!%p409_p7)
}
  0x11   :  { %s464_s28 = smov 64   ;;  %s465_s29 = smov 4  }
  0x12   :  { %26 = dma.hbm_to_vmem [thread:$0]  %s546_s1, 1024, %s21_s19, [#allocation3], %s464_s28, %s464_s28, %s465_s29  }
  0x13   :  { %s466_s7 = smov [#allocation5]   ;;  %s413_s11 = scalar_lea.hbm %s548_s3, 1024 }
  0x14   :  { %s34_s8 = sshll.u32 %s466_s7, 4  ;;  %p414_p8 = scmp.ne.s32.totalorder %s548_s3, %s413_s11  ;;  %s35_s8 = int_to_ptr.vmem [resolvable:$true] %s34_s8 }
  0x15   :  { %p417_p9 = scmp.lt.u32.totalorder %s413_s11, %s548_s3 }
  0x17   :  { %p419_p10 = pnand %p417_p9, %p414_p8 }
  0x19   :  { %422 = shalt.err (!%p419_p10)
}
  0x1a   :  { %s423_s16 = scalar_lea.vmem %s35_s8, 1024  ;;  %p428_p12 = scmp.lt.s32.totalorder %s35_s8, %s35_s8 }
  0x1b   :  { %p424_p11 = scmp.ne.s32.totalorder %s35_s8, %s423_s16  ;;  %p429_p13 = scmp.lt.s32.totalorder %s423_s16, %s423_s16 }
  0x1d   :  { %p430_p0 = por %p429_p13, %p428_p12 }
  0x1f   :  { %p431_p1 = pnand %p430_p0, %p424_p11 }
  0x21   :  { %434 = shalt.err (!%p431_p1)
}
  0x22   :  { %40 = dma.hbm_to_vmem [thread:$0]  %s548_s3, 1024, %s35_s8, [#allocation6], %s464_s28, %s464_s28, %s465_s29  }
  0x23   :  { %457 = dma.done.wait [#allocation3], 1024  }
  0x24   :  { %458 = vsyncadd [#allocation3], 4294966272 }
  0x25   :  { %459 = dma.done.wait [#allocation6], 1024  }
  0x26   :  { %460 = vsyncadd [#allocation6], 4294966272  ;;  %v467_v0 = vmov 0.0   ;;  %vm468_vm0 = vmmov 0   ;;  %v375_v1 = vld [vmem:[#allocation2] sm:$0xff]   ;;  %v376_v2 = vld [vmem:[#allocation2 + $0x8] sm:$0xff]  }
  0x27   :  { %328 = vmatprep.subr.bf16.mxu0 %v467_v0  ;;  %344 = vmatprep.mubr.msk.bf16.mxu0 %vm468_vm0, %v467_v0  ;;  %v377_v3 = vld [vmem:[#allocation2 + $0x10] sm:$0xff]   ;;  %v383_v4 = vld [vmem:[#allocation5] sm:$0xff]   ;;  %v378_v5 = vld [vmem:[#allocation2 + $0x18] sm:$0xff]   ;;  %s469_s22 = smov [#allocation7]  }
  0x28   :  { %348 = vmatprep.subr.bf16.mxu1 %v467_v0  ;;  %364 = vmatprep.mubr.msk.bf16.mxu1 %vm468_vm0, %v467_v0  ;;  %v384_v6 = vld [vmem:[#allocation5 + $0x8] sm:$0xff]   ;;  %v379_v7 = vld [vmem:[#allocation2 + $0x20] sm:$0xff]   ;;  %v385_v8 = vld [vmem:[#allocation5 + $0x10] sm:$0xff]   ;;  %s282_s23 = sshll.u32 %s469_s22, 4  ;;  %s283_s23 = int_to_ptr.vmem [resolvable:$true] %s282_s23 }
  0x29   :  { %329 = vmatpush3.bf16.msra.mxu0 %v375_v1  ;;  %349 = vmatpush3.bf16.msra.mxu1 %v383_v4  ;;  %v380_v9 = vld [vmem:[#allocation2 + $0x28] sm:$0xff]   ;;  %v386_v10 = vld [vmem:[#allocation5 + $0x18] sm:$0xff]   ;;  %v381_v11 = vld [vmem:[#allocation2 + $0x30] sm:$0xff]   ;;  %p440_p3 = scmp.lt.s32.totalorder %s283_s23, %s283_s23 }
  0x2a   :  { %330 = vmatprep.subr.bf16.mxu0 %v467_v0  ;;  %350 = vmatprep.subr.bf16.mxu1 %v467_v0  ;;  %v387_v12 = vld [vmem:[#allocation5 + $0x20] sm:$0xff]   ;;  %v382_v13 = vld [vmem:[#allocation2 + $0x38] sm:$0xff]   ;;  %v388_v14 = vld [vmem:[#allocation5 + $0x28] sm:$0xff]  }
  0x2b   :  { %v50_v15 = vld [vmem:[%s545_s0] sm:$0xf]  ;;  %v389_v16 = vld [vmem:[#allocation5 + $0x30] sm:$0xff]   ;;  %v390_v17 = vld [vmem:[#allocation5 + $0x38] sm:$0xff]  }
  0x2c   :  { %v292_v18 = vld [vmem:[%s547_s2] ss:$0 sm:$0xff]  ;;  %s435_s2 = scalar_lea.vmem %s283_s23, 128 }
  0x2d   :  { %331 = vmatpush3.bf16.msra.mxu0 %v376_v2  ;;  %351 = vmatpush3.bf16.msra.mxu1 %v384_v6  ;;  %v301_v26 = vld [vmem:[%s549_s4] ss:$0 sm:$0xff]  ;;  %p436_p2 = scmp.ne.s32.totalorder %s283_s23, %s435_s2  ;;  %p441_p4 = scmp.lt.s32.totalorder %s435_s2, %s435_s2 }
  0x2e   :  { %332 = vmatprep.subr.bf16.mxu0 %v467_v0  ;;  %352 = vmatprep.subr.bf16.mxu1 %v467_v0 }
  0x2f   :  { %p442_p5 = por %p441_p4, %p440_p3 }
  0x31   :  { %333 = vmatpush3.bf16.msra.mxu0 %v377_v3  ;;  %353 = vmatpush3.bf16.msra.mxu1 %v385_v8  ;;  %p443_p6 = pnand %p442_p5, %p436_p2 }
  0x32   :  { %334 = vmatprep.subr.bf16.mxu0 %v467_v0  ;;  %354 = vmatprep.subr.bf16.mxu1 %v467_v0 }
  0x35   :  { %335 = vmatpush3.bf16.msra.mxu0 %v378_v5  ;;  %355 = vmatpush3.bf16.msra.mxu1 %v386_v10 }
  0x36   :  { %336 = vmatprep.subr.bf16.mxu0 %v467_v0  ;;  %356 = vmatprep.subr.bf16.mxu1 %v467_v0 }
  0x39   :  { %337 = vmatpush3.bf16.msra.mxu0 %v379_v7  ;;  %357 = vmatpush3.bf16.msra.mxu1 %v387_v12 }
  0x3a   :  { %338 = vmatprep.subr.bf16.mxu0 %v467_v0  ;;  %358 = vmatprep.subr.bf16.mxu1 %v467_v0 }
  0x3d   :  { %339 = vmatpush3.bf16.msra.mxu0 %v380_v9  ;;  %359 = vmatpush3.bf16.msra.mxu1 %v388_v14 }
  0x3e   :  { %340 = vmatprep.subr.bf16.mxu0 %v467_v0  ;;  %360 = vmatprep.subr.bf16.mxu1 %v467_v0 }
  0x41   :  { %341 = vmatpush3.bf16.msra.mxu0 %v381_v11  ;;  %361 = vmatpush3.bf16.msra.mxu1 %v389_v16 }
  0x42   :  { %342 = vmatprep.subr.bf16.mxu0 %v467_v0  ;;  %362 = vmatprep.subr.bf16.mxu1 %v467_v0 }
  0x45   :  { %343 = vmatpush3.bf16.msra.mxu0 %v382_v13  ;;  %363 = vmatpush3.bf16.msra.mxu1 %v390_v17 }
  0x48   :  { %345 = vmatmul.mubr.bf16.vlgmr.msra.gmra.mrb[0].mxu0 %v50_v15 }
 0x11b   :  { %v156_v19 = vpop.f32.mrb[0].mxu0 }
 0x11c   :  { %v157_v20 = vadd.f32 %v292_v18, %v156_v19  ;;  %v346_v21 = vpop.f32.mrb[1].mxu0 }
 0x11d   :  { %v159_v22 = vpop.f32.mrb[2].mxu0 }
 0x11e   :  { %v162_v23 = vmax.f32 %v157_v20, 0.0  ;;  %v347_v24 = vpop.f32.mrb[3].mxu0 }
 0x120   :  { %v163_v25 = vpack.c.bf16 %v162_v23, %v162_v23 }
 0x122   :  { %365 = vmatmul.mubr.bf16.vlgmr.msra.gmra.mrb[0].mxu1 %v163_v25 }
 0x1f5   :  { %v269_v27 = vpop.f32.mrb[0].mxu1 }
 0x1f6   :  { %v270_v28 = vadd.f32 %v301_v26, %v269_v27  ;;  %v366_v29 = vpop.f32.mrb[1].mxu1 }
 0x1f7   :  { %v272_v30 = vpop.f32.mrb[2].mxu1 }
 0x1f8   :  { %275 = vst [vmem:[#allocation7] sm:$0xff] %v270_v28  ;;  %v367_v31 = vpop.f32.mrb[3].mxu1 }
 0x1f9   :  { %446 = shalt.err (!%p443_p6)
}
 0x1fa   :  { %s447_s4 = scalar_lea.hbm %s550_s5, 128 }
 0x1fb   :  { %p448_p7 = scmp.ne.s32.totalorder %s550_s5, %s447_s4  ;;  %p451_p8 = scmp.lt.u32.totalorder %s447_s4, %s550_s5 }
 0x1fd   :  { %p453_p9 = pnand %p451_p8, %p448_p7 }
 0x1ff   :  { %456 = shalt.err (!%p453_p9)
}
 0x200   :  { %285 = dma.vmem_to_hbm [thread:$0]  %s283_s23, 128, %s550_s5, [#allocation4]  }
 0x201   :  { %461 = dma.done.wait [#allocation4], 128  }
 0x202   :  { %462 = vsyncadd [#allocation4], 4294967168 }
 0x203   :  { %289 = vsyncpa [#allocation3], 1 }
 0x204   :  { %290 = vsyncpa [#allocation6], 1 }
 0x205   :  { %291 = vsyncpa [#allocation4], 1 }

</bundles_post_ra>
